<compile_context>
chip_gen: v7x
topology: tpu7x:2x2x1
jax: 0.10.0
libtpu: 0.0.40
codegen_flags: <defaults>
</compile_context>

<pallas_src>
import functools

import numpy as np
import jax
import jax.numpy as jnp
from jax.experimental import pallas as pl
from jax.experimental.pallas import tpu as pltpu


# ------------------------------ small helpers --------------------------------
def _pad_axis(a, axis, mult):
    """Zero-pad `a` along `axis` up to the next multiple of `mult`."""
    pad = (-a.shape[axis]) % mult
    if pad == 0:
        return a
    widths = [(0, 0)] * a.ndim
    widths[axis] = (0, pad)
    return jnp.pad(a, widths)


_VMEM = pl.BlockSpec(memory_space=pltpu.MemorySpace.VMEM)


def _vmem_limit_bytes(n_pad, f_pad, hid_pad, d_pad, n_rows, d_out):
    est = (n_pad * f_pad * 4                      # x (f32)
           + f_pad * hid_pad * 2                  # W1 (bf16)
           + hid_pad * d_pad * 2                  # W2 (bf16)
           + (hid_pad + d_pad) * 4                # biases
           + n_pad * hid_pad * 4 * 2              # h (f32) + bf16 copy
           + n_pad * d_pad * 4 * 2                # z full + scratch
           + n_rows * d_out * 4                   # z out
           + 8 * 128 * 4 * 4)                     # small loss-side intermediates
    return int(min(max(2 * est, 32 * 1024 * 1024), 64 * 1024 * 1024))


# ----------------------------- fused Pallas kernel ----------------------------
def _protoclr_kernel(x_ref, w1_ref, b1_ref, w2_ref, b2_ref, y_ref,
                     z_ref, loss_ref, acc_ref, pred_ref, mask_ref, *,
                     n_proto, n_query, n_rows, d_out, spl_keep):
    # ---------------- encoder: z = relu(x @ W1 + b1) @ W2 + b2 ---------------
    # x arrives f32 (no bf16 copy in HBM); cast to bf16 for the MXU here.
    x = x_ref[...].astype(jnp.bfloat16)
    h = jnp.dot(x, w1_ref[...], preferred_element_type=jnp.float32)
    h = jnp.maximum(h + b1_ref[...], 0.0)
    z = jnp.dot(h.astype(jnp.bfloat16), w2_ref[...],
                preferred_element_type=jnp.float32) + b2_ref[...]
    z_ref[...] = z[:n_rows, :d_out]               # lane/sublane padding stripped

    # --------------- prototypical loss (classes x queries layout) ------------
    # Padded feature columns of z are exactly 0, so p/q slices are exact.
    p = z[:n_proto]                               # [W, Dp] prototypes (n_support == 1)
    q = z[n_proto:n_proto + n_query]              # [Q, Dp] query embeddings

    # logits[c, i] = 2 * p_c . q_i - |p_c|^2   (|q_i|^2 is constant per query
    # and cancels in both softmax and argmax, so it is dropped entirely.)
    nt = (((1,), (1,)), ((), ()))                 # contract last dims: A @ B^T
    pq = jax.lax.dot_general(p, q, nt, preferred_element_type=jnp.float32)  # [W, Q]
    pn = jnp.sum(p * p, axis=1, keepdims=True)                              # [W, 1]
    logits = 2.0 * pq - pn                                                  # [W, Q]

    # per-query cross entropy  (== F.cross_entropy(dist_logits, y, 'none'))
    m = jnp.max(logits, axis=0, keepdims=True)                              # [1, Q]
    lse = m + jnp.log(jnp.sum(jnp.exp(logits - m), axis=0, keepdims=True))  # [1, Q]
    logp = logits - lse                                                     # [W, Q]

    cls = jax.lax.broadcasted_iota(jnp.int32, logp.shape, 0)                # [W, Q]
    onehot = (cls == y_ref[...]).astype(jnp.float32)                        # y: [1, Q]
    ln = -jnp.sum(onehot * logp, axis=0, keepdims=True)                     # [1, Q]

    # predictions = argmin_c dist = argmax_c logits, first index on ties
    clsf = cls.astype(jnp.float32)
    pred = jnp.min(jnp.where(logits >= m, clsf, 1e9), axis=0,
                   keepdims=True).astype(jnp.int32)                         # [1, Q]
    pred_ref[...] = pred

    # --------------------- self-paced (SPL) selection -------------------------
    # threshold = sorted(ln)[-spl_keep]  (== spl_keep-th largest, counting
    # duplicates; spl_keep == 0 falls back to the minimum, matching Python's
    # list[-0] == list[0]).  Computed row-only (lane reductions) so no
    # cross-lane relayout is needed.
    # TODO(synk): for very large Q switch to a [Q,Q] rank-count or host sort.
    lane = jax.lax.broadcasted_iota(jnp.int32, (1, n_query), 1)             # [1, Q]
    work = ln
    thr = jnp.min(ln, axis=1, keepdims=True)                                # [1, 1]
    for _ in range(spl_keep):                       # static, fully unrolled
        cur = jnp.max(work, axis=1, keepdims=True)                          # [1, 1]
        first = jnp.min(jnp.where(work >= cur, lane, n_query),
                        axis=1, keepdims=True)                              # [1, 1]
        work = jnp.where(lane == first, -jnp.inf, work)  # knock out ONE occurrence
        thr = cur

    mask = ln < thr + 0.001                                                 # [1, Q]
    maskf = mask.astype(jnp.float32)
    cnt = jnp.maximum(jnp.sum(maskf, axis=1, keepdims=True), 1.0)           # [1, 1]

    # masked re-reductions == second prototypical_loss call over the selection
    loss_ref[...] = jnp.sum(jnp.where(mask, ln, 0.0), axis=1, keepdims=True) / cnt
    correct = (pred == y_ref[...]).astype(jnp.float32)                      # [1, Q]
    acc_ref[...] = jnp.sum(maskf * correct, axis=1, keepdims=True) / cnt
    mask_ref[...] = mask.astype(jnp.int32)


def _core(x_flat, y_row, w1, b1, w2, b2, *, n_proto, n_query, spl_keep, d_out):
    """Runs inside jit: pad to MXU-native shapes and invoke the fused kernel."""
    n_rows = x_flat.shape[0]
    x = _pad_axis(_pad_axis(x_flat, 0, 8), 1, 128)          # f32, (8,128)-aligned
    n_pad, f_pad = x.shape
    hid_pad, d_pad = w1.shape[1], w2.shape[1]

    kernel = functools.partial(_protoclr_kernel, n_proto=n_proto,
                               n_query=n_query, n_rows=n_rows, d_out=d_out,
                               spl_keep=spl_keep)
    z, loss, acc, pred, mask = pl.pallas_call(
        kernel,
        out_shape=(jax.ShapeDtypeStruct((n_rows, d_out), jnp.float32),   # z
                   jax.ShapeDtypeStruct((1, 1), jnp.float32),            # loss
                   jax.ShapeDtypeStruct((1, 1), jnp.float32),            # accuracy
                   jax.ShapeDtypeStruct((1, n_query), jnp.int32),        # predictions
                   jax.ShapeDtypeStruct((1, n_query), jnp.int32)),       # SPL mask
        in_specs=[_VMEM] * 6,
        out_specs=(_VMEM,) * 5,
        compiler_params=pltpu.CompilerParams(
            vmem_limit_bytes=_vmem_limit_bytes(n_pad, f_pad, hid_pad, d_pad,
                                               n_rows, d_out)),
    )(x, w1, b1, w2, b2, y_row)

    return z.reshape(1, n_rows, d_out), loss[0, 0], acc[0, 0], pred, mask


# ------------------------- jitted per-episode entry points --------------------
@functools.partial(jax.jit,
                   static_argnames=("n_support", "n_query", "spl_keep", "d_out"))
def _episode_from_data(data, w1, b1, w2, b2, *, n_support, n_query, spl_keep, d_out):
    """batch = {'data': [ways, n_support+n_query, C, H, W]} path (bsz == 1)."""
    ways = data.shape[0]
    xs = data[:, :n_support].reshape(ways * n_support, -1)
    xq = data[:, n_support:].reshape(ways * n_query, -1)
    x_flat = jnp.concatenate([xs, xq], axis=0)
    # y is a compile-time constant here (ways / n_query are static).
    y_row = jnp.tile(jnp.arange(ways, dtype=jnp.int32)[:, None],
                     (1, n_query)).reshape(1, -1)
    return _core(x_flat, y_row, w1, b1, w2, b2,
                 n_proto=ways * n_support, n_query=ways * n_query,
                 spl_keep=spl_keep, d_out=d_out)


@functools.partial(jax.jit, static_argnames=("spl_keep", "d_out"))
def _episode_from_split(x_support, x_query, y_query, w1, b1, w2, b2, *,
                        spl_keep, d_out):
    """batch = {'train': (x, y), 'test': (x, y)} path (bsz == 1, n_support == 1)."""
    ns, nq = x_support.shape[1], x_query.shape[1]
    x_flat = jnp.concatenate([x_support.reshape(ns, -1),
                              x_query.reshape(nq, -1)], axis=0)
    y_row = y_query.reshape(1, nq).astype(jnp.int32)
    return _core(x_flat, y_row, w1, b1, w2, b2,
                 n_proto=ns, n_query=nq, spl_keep=spl_keep, d_out=d_out)


# ---------------------------------- module ------------------------------------
class ProtoCLRSPL:
    """JAX / Pallas port of ProtoCLR_spl (n_support == 1 path, euclidean)."""

    def __init__(self, encoder_params, n_support=1, n_query=1,
                 distance='euclidean', spl=0.5):
        assert distance == 'euclidean'  # TODO(synk): cosine distance not implemented.
        # spl must be a fraction; the original default spl=3 indexes past the
        # sorted loss list for small query sets.
        assert 0.0 < spl <= 1.0
        if n_support != 1:
            # TODO(synk): get_prototypes (label-averaged prototypes) for n_support > 1.
            raise NotImplementedError("n_support > 1 not supported")
        self.n_support = n_support
        self.n_query = n_query
        self.distance = distance
        self.spl = spl

        w1 = jnp.asarray(encoder_params['w1'], jnp.float32)
        b1 = jnp.asarray(encoder_params['b1'], jnp.float32).reshape(1, -1)
        w2 = jnp.asarray(encoder_params['w2'], jnp.float32)
        b2 = jnp.asarray(encoder_params['b2'], jnp.float32).reshape(1, -1)
        self.d_out = int(w2.shape[1])
        # One-time padding to 128-lane-aligned bf16 storage (NOT 256: the kernel
        # is W1-DMA bound, extra padding only inflates the dominant transfer).
        # Zero padding keeps z / distances exactly unchanged.
        self.w1 = _pad_axis(_pad_axis(w1, 0, 128), 1, 128).astype(jnp.bfloat16)
        self.b1 = _pad_axis(b1, 1, 128)
        self.w2 = _pad_axis(_pad_axis(w2, 0, 128), 1, 128).astype(jnp.bfloat16)
        self.b2 = _pad_axis(b2, 1, 128)

    def forward(self, batch):
        if len(batch) == 1:
            data = jnp.asarray(batch['data'], jnp.float32)  # [ways, ns+nq, C, H, W]
            ways = int(data.shape[0])
            qt = ways * self.n_query
            spl_keep = int(qt * self.spl)
            z, loss, accuracy, preds, mask = _episode_from_data(
                data, self.w1, self.b1, self.w2, self.b2,
                n_support=self.n_support, n_query=self.n_query,
                spl_keep=spl_keep, d_out=self.d_out)
        else:
            x_support, _y_support = batch['train']
            x_query, y_query = batch['test']
            x_support = jnp.asarray(x_support, jnp.float32)
            x_query = jnp.asarray(x_query, jnp.float32)
            y_query = jnp.asarray(y_query, jnp.int32)
            # TODO(synk): batch multiple episodes (bsz > 1) into one pallas_call.
            assert x_support.shape[0] == 1
            qt = int(y_query.shape[1])
            spl_keep = int(qt * self.spl)
            z, loss, accuracy, preds, mask = _episode_from_split(
                x_support, x_query, y_query,
                self.w1, self.b1, self.w2, self.b2,
                spl_keep=spl_keep, d_out=self.d_out)

        # Single D2H sync, required only because the module's contract returns a
        # Python `index` list and a selection-sized prediction tensor.  Built in
        # numpy (no re-upload to device).
        mask_np, preds_np = jax.device_get((mask, preds))
        index = np.nonzero(mask_np[0])[0].tolist()
        predictions = preds_np[:, index]

        return z, loss, accuracy, predictions, index


# ---------------------------------- main --------------------------------------
if __name__ == "__main__":
    key = jax.random.PRNGKey(0)
    k_data, k_w1, k_w2 = jax.random.split(key, 3)

    ways, n_support, n_query = 4, 1, 2
    C, H, W = 4, 16, 16
    F_in, HID, D = C * H * W, 128, 128

    data = jax.random.normal(k_data, (ways, n_support + n_query, C, H, W),
                             dtype=jnp.float32)

    params = dict(
        w1=0.05 * jax.random.normal(k_w1, (F_in, HID), dtype=jnp.float32),
        b1=jnp.zeros((1, HID), dtype=jnp.float32),
        w2=0.05 * jax.random.normal(k_w2, (HID, D), dtype=jnp.float32),
        b2=jnp.zeros((1, D), dtype=jnp.float32),
    )

    model = ProtoCLRSPL(params, n_support=n_support, n_query=n_query,
                        distance='euclidean', spl=0.5)

    z, loss, accuracy, predictions, index = model.forward({'data': data})
    jax.block_until_ready((z, loss, accuracy))
    assert z.shape == (1, ways * (n_support + n_query), D)
    assert predictions.shape[1] == len(index) and len(index) >= 1
    print("KERNEL_OK")
</pallas_src>

<mosaic_0001>
module attributes {stable_mosaic.version = 11 : i64} {
  func.func @_protoclr_kernel(%arg0: memref<16x1024xf32, #tpu.memory_space<vmem>>, %arg1: memref<1024x128xbf16, #tpu.memory_space<vmem>>, %arg2: memref<1x128xf32, #tpu.memory_space<vmem>>, %arg3: memref<128x128xbf16, #tpu.memory_space<vmem>>, %arg4: memref<1x128xf32, #tpu.memory_space<vmem>>, %arg5: memref<1x8xi32, #tpu.memory_space<vmem>>, %arg6: memref<12x128xf32, #tpu.memory_space<vmem>>, %arg7: memref<1x1xf32, #tpu.memory_space<vmem>>, %arg8: memref<1x1xf32, #tpu.memory_space<vmem>>, %arg9: memref<1x8xi32, #tpu.memory_space<vmem>>, %arg10: memref<1x8xi32, #tpu.memory_space<vmem>>) attributes {dimension_semantics = [], scalar_prefetch = 0 : i64, scratch_operands = 0 : i64, tpu.core_type = #tpu.core_type<tc>} {
    %c0 = arith.constant 0 : index
    %c0_0 = arith.constant 0 : index
    %0 = vector.load %arg0[%c0, %c0_0] : memref<16x1024xf32, #tpu.memory_space<vmem>>, vector<16x1024xf32>
    %1 = arith.truncf %0 : vector<16x1024xf32> to vector<16x1024xbf16>
    %c0_1 = arith.constant 0 : index
    %c0_2 = arith.constant 0 : index
    %2 = vector.load %arg1[%c0_1, %c0_2] : memref<1024x128xbf16, #tpu.memory_space<vmem>>, vector<1024x128xbf16>
    %cst = arith.constant dense<0.000000e+00> : vector<16x128xf32>
    %3 = tpu.matmul %1, %2, %cst {dimension_numbers = #tpu.dot_dimension_numbers<[1], [0], [0], [1], [0, 0, 1, 1], [], []>} : vector<16x1024xbf16>, vector<1024x128xbf16>, vector<16x128xf32> -> vector<16x128xf32>
    %c0_3 = arith.constant 0 : index
    %c0_4 = arith.constant 0 : index
    %4 = vector.load %arg2[%c0_3, %c0_4] : memref<1x128xf32, #tpu.memory_space<vmem>>, vector<1x128xf32>
    %5 = vector.broadcast %4 : vector<1x128xf32> to vector<16x128xf32>
    %6 = arith.addf %3, %5 : vector<16x128xf32>
    %cst_5 = arith.constant 0.000000e+00 : f32
    %7 = vector.broadcast %cst_5 : f32 to vector<16x128xf32>
    %8 = arith.maximumf %6, %7 : vector<16x128xf32>
    %9 = arith.truncf %8 : vector<16x128xf32> to vector<16x128xbf16>
    %c0_6 = arith.constant 0 : index
    %c0_7 = arith.constant 0 : index
    %10 = vector.load %arg3[%c0_6, %c0_7] : memref<128x128xbf16, #tpu.memory_space<vmem>>, vector<128x128xbf16>
    %cst_8 = arith.constant dense<0.000000e+00> : vector<16x128xf32>
    %11 = tpu.matmul %9, %10, %cst_8 {dimension_numbers = #tpu.dot_dimension_numbers<[1], [0], [0], [1], [0, 0, 1, 1], [], []>} : vector<16x128xbf16>, vector<128x128xbf16>, vector<16x128xf32> -> vector<16x128xf32>
    %c0_9 = arith.constant 0 : index
    %c0_10 = arith.constant 0 : index
    %12 = vector.load %arg4[%c0_9, %c0_10] : memref<1x128xf32, #tpu.memory_space<vmem>>, vector<1x128xf32>
    %13 = vector.broadcast %12 : vector<1x128xf32> to vector<16x128xf32>
    %14 = arith.addf %11, %13 : vector<16x128xf32>
    %15 = vector.extract_strided_slice %14 {offsets = [0, 0], sizes = [12, 128], strides = [1, 1]} : vector<16x128xf32> to vector<12x128xf32>
    %c0_11 = arith.constant 0 : index
    %c0_12 = arith.constant 0 : index
    %16 = vector.load %arg6[%c0_11, %c0_12] : memref<12x128xf32, #tpu.memory_space<vmem>>, vector<12x128xf32>
    tpu.vector_store %arg6[%c0_11, %c0_12], %15 {strides = array<i32>} : memref<12x128xf32, #tpu.memory_space<vmem>>, vector<12x128xf32>,
    %17 = vector.extract_strided_slice %14 {offsets = [0, 0], sizes = [4, 128], strides = [1, 1]} : vector<16x128xf32> to vector<4x128xf32>
    %18 = vector.extract_strided_slice %14 {offsets = [4, 0], sizes = [8, 128], strides = [1, 1]} : vector<16x128xf32> to vector<8x128xf32>
    %cst_13 = arith.constant dense<0.000000e+00> : vector<4x8xf32>
    %19 = tpu.matmul %17, %18, %cst_13 {dimension_numbers = #tpu.dot_dimension_numbers<[1], [1], [0], [0], [0, 0, 1, 0], [], []>} : vector<4x128xf32>, vector<8x128xf32>, vector<4x8xf32> -> vector<4x8xf32>
    %20 = arith.mulf %17, %17 : vector<4x128xf32>
    %cst_14 = arith.constant dense<0.000000e+00> : vector<4xf32>
    %21 = vector.multi_reduction <add>, %20, %cst_14 [1] : vector<4x128xf32> to vector<4xf32>
    %22 = vector.shape_cast %21 : vector<4xf32> to vector<4x1xf32>
    %cst_15 = arith.constant 2.000000e+00 : f32
    %23 = vector.broadcast %cst_15 : f32 to vector<4x8xf32>
    %24 = arith.mulf %23, %19 : vector<4x8xf32>
    %25 = vector.broadcast %22 : vector<4x1xf32> to vector<4x8xf32>
    %26 = arith.subf %24, %25 : vector<4x8xf32>
    %cst_16 = arith.constant dense<0xFF800000> : vector<8xf32>
    %27 = vector.multi_reduction <maximumf>, %26, %cst_16 [0] : vector<4x8xf32> to vector<8xf32>
    %28 = vector.shape_cast %27 : vector<8xf32> to vector<1x8xf32>
    %29 = vector.broadcast %28 : vector<1x8xf32> to vector<4x8xf32>
    %30 = arith.subf %26, %29 : vector<4x8xf32>
    %31 = math.exp %30 : vector<4x8xf32>
    %cst_17 = arith.constant dense<0.000000e+00> : vector<8xf32>
    %32 = vector.multi_reduction <add>, %31, %cst_17 [0] : vector<4x8xf32> to vector<8xf32>
    %33 = vector.shape_cast %32 : vector<8xf32> to vector<1x8xf32>
    %34 = math.log %33 : vector<1x8xf32>
    %35 = arith.addf %28, %34 : vector<1x8xf32>
    %36 = vector.broadcast %35 : vector<1x8xf32> to vector<4x8xf32>
    %37 = arith.subf %26, %36 : vector<4x8xf32>
    %38 = tpu.iota {dimensions = array<i32: 0>} : vector<4x8xi32>
    %c0_18 = arith.constant 0 : index
    %c0_19 = arith.constant 0 : index
    %39 = vector.load %arg5[%c0_18, %c0_19] : memref<1x8xi32, #tpu.memory_space<vmem>>, vector<1x8xi32>
    %40 = vector.broadcast %39 : vector<1x8xi32> to vector<4x8xi32>
    %41 = arith.cmpi eq, %38, %40 : vector<4x8xi32>
    %42 = arith.extui %41 : vector<4x8xi1> to vector<4x8xi32>
    %43 = arith.sitofp %42 : vector<4x8xi32> to vector<4x8xf32>
    %44 = arith.mulf %43, %37 : vector<4x8xf32>
    %cst_20 = arith.constant dense<0.000000e+00> : vector<8xf32>
    %45 = vector.multi_reduction <add>, %44, %cst_20 [0] : vector<4x8xf32> to vector<8xf32>
    %46 = vector.shape_cast %45 : vector<8xf32> to vector<1x8xf32>
    %cst_21 = arith.constant 0.000000e+00 : f32
    %47 = vector.broadcast %cst_21 : f32 to vector<1x8xf32>
    %48 = arith.subf %47, %46 : vector<1x8xf32>
    %49 = arith.sitofp %38 : vector<4x8xi32> to vector<4x8xf32>
    %50 = vector.broadcast %28 : vector<1x8xf32> to vector<4x8xf32>
    %51 = arith.cmpf oge, %26, %50 : vector<4x8xf32>
    %cst_22 = arith.constant 1.000000e+09 : f32
    %52 = vector.broadcast %cst_22 : f32 to vector<4x8xf32>
    %53 = arith.select %51, %49, %52 : vector<4x8xi1>, vector<4x8xf32>
    %cst_23 = arith.constant dense<0x7F800000> : vector<8xf32>
    %54 = vector.multi_reduction <minimumf>, %53, %cst_23 [0] : vector<4x8xf32> to vector<8xf32>
    %55 = vector.shape_cast %54 : vector<8xf32> to vector<1x8xf32>
    %56 = arith.fptosi %55 : vector<1x8xf32> to vector<1x8xi32>
    %c0_24 = arith.constant 0 : index
    %c0_25 = arith.constant 0 : index
    %57 = vector.load %arg9[%c0_24, %c0_25] : memref<1x8xi32, #tpu.memory_space<vmem>>, vector<1x8xi32>
    tpu.vector_store %arg9[%c0_24, %c0_25], %56 {strides = array<i32>} : memref<1x8xi32, #tpu.memory_space<vmem>>, vector<1x8xi32>,
    %58 = tpu.iota {dimensions = array<i32: 1>} : vector<1x8xi32>
    %cst_26 = arith.constant dense<0xFF800000> : vector<1xf32>
    %59 = vector.multi_reduction <maximumf>, %48, %cst_26 [1] : vector<1x8xf32> to vector<1xf32>
    %60 = vector.shape_cast %59 : vector<1xf32> to vector<1x1xf32>
    %61 = vector.broadcast %60 : vector<1x1xf32> to vector<1x8xf32>
    %62 = arith.cmpf oge, %48, %61 : vector<1x8xf32>
    %c8_i32 = arith.constant 8 : i32
    %63 = vector.broadcast %c8_i32 : i32 to vector<1x8xi32>
    %64 = arith.select %62, %58, %63 : vector<1x8xi1>, vector<1x8xi32>
    %cst_27 = arith.constant dense<2147483647> : vector<1xi32>
    %65 = vector.multi_reduction <minsi>, %64, %cst_27 [1] : vector<1x8xi32> to vector<1xi32>
    %66 = vector.shape_cast %65 : vector<1xi32> to vector<1x1xi32>
    %67 = vector.broadcast %66 : vector<1x1xi32> to vector<1x8xi32>
    %68 = arith.cmpi eq, %58, %67 : vector<1x8xi32>
    %cst_28 = arith.constant 0xFF800000 : f32
    %69 = vector.broadcast %cst_28 : f32 to vector<1x8xf32>
    %70 = arith.select %68, %69, %48 : vector<1x8xi1>, vector<1x8xf32>
    %cst_29 = arith.constant dense<0xFF800000> : vector<1xf32>
    %71 = vector.multi_reduction <maximumf>, %70, %cst_29 [1] : vector<1x8xf32> to vector<1xf32>
    %72 = vector.shape_cast %71 : vector<1xf32> to vector<1x1xf32>
    %73 = vector.broadcast %72 : vector<1x1xf32> to vector<1x8xf32>
    %74 = arith.cmpf oge, %70, %73 : vector<1x8xf32>
    %c8_i32_30 = arith.constant 8 : i32
    %75 = vector.broadcast %c8_i32_30 : i32 to vector<1x8xi32>
    %76 = arith.select %74, %58, %75 : vector<1x8xi1>, vector<1x8xi32>
    %cst_31 = arith.constant dense<2147483647> : vector<1xi32>
    %77 = vector.multi_reduction <minsi>, %76, %cst_31 [1] : vector<1x8xi32> to vector<1xi32>
    %78 = vector.shape_cast %77 : vector<1xi32> to vector<1x1xi32>
    %79 = vector.broadcast %78 : vector<1x1xi32> to vector<1x8xi32>
    %80 = arith.cmpi eq, %58, %79 : vector<1x8xi32>
    %cst_32 = arith.constant 0xFF800000 : f32
    %81 = vector.broadcast %cst_32 : f32 to vector<1x8xf32>
    %82 = arith.select %80, %81, %70 : vector<1x8xi1>, vector<1x8xf32>
    %cst_33 = arith.constant dense<0xFF800000> : vector<1xf32>
    %83 = vector.multi_reduction <maximumf>, %82, %cst_33 [1] : vector<1x8xf32> to vector<1xf32>
    %84 = vector.shape_cast %83 : vector<1xf32> to vector<1x1xf32>
    %85 = vector.broadcast %84 : vector<1x1xf32> to vector<1x8xf32>
    %86 = arith.cmpf oge, %82, %85 : vector<1x8xf32>
    %c8_i32_34 = arith.constant 8 : i32
    %87 = vector.broadcast %c8_i32_34 : i32 to vector<1x8xi32>
    %88 = arith.select %86, %58, %87 : vector<1x8xi1>, vector<1x8xi32>
    %cst_35 = arith.constant dense<2147483647> : vector<1xi32>
    %89 = vector.multi_reduction <minsi>, %88, %cst_35 [1] : vector<1x8xi32> to vector<1xi32>
    %90 = vector.shape_cast %89 : vector<1xi32> to vector<1x1xi32>
    %91 = vector.broadcast %90 : vector<1x1xi32> to vector<1x8xi32>
    %92 = arith.cmpi eq, %58, %91 : vector<1x8xi32>
    %cst_36 = arith.constant 0xFF800000 : f32
    %93 = vector.broadcast %cst_36 : f32 to vector<1x8xf32>
    %94 = arith.select %92, %93, %82 : vector<1x8xi1>, vector<1x8xf32>
    %cst_37 = arith.constant dense<0xFF800000> : vector<1xf32>
    %95 = vector.multi_reduction <maximumf>, %94, %cst_37 [1] : vector<1x8xf32> to vector<1xf32>
    %96 = vector.shape_cast %95 : vector<1xf32> to vector<1x1xf32>
    %cst_38 = arith.constant 1.000000e-03 : f32
    %97 = vector.broadcast %cst_38 : f32 to vector<1x1xf32>
    %98 = arith.addf %96, %97 : vector<1x1xf32>
    %99 = vector.broadcast %98 : vector<1x1xf32> to vector<1x8xf32>
    %100 = arith.cmpf olt, %48, %99 : vector<1x8xf32>
    %101 = arith.extui %100 : vector<1x8xi1> to vector<1x8xi32>
    %102 = arith.sitofp %101 : vector<1x8xi32> to vector<1x8xf32>
    %cst_39 = arith.constant dense<0.000000e+00> : vector<1xf32>
    %103 = vector.multi_reduction <add>, %102, %cst_39 [1] : vector<1x8xf32> to vector<1xf32>
    %104 = vector.shape_cast %103 : vector<1xf32> to vector<1x1xf32>
    %cst_40 = arith.constant 1.000000e+00 : f32
    %105 = vector.broadcast %cst_40 : f32 to vector<1x1xf32>
    %106 = arith.maximumf %104, %105 : vector<1x1xf32>
    %cst_41 = arith.constant 0.000000e+00 : f32
    %107 = vector.broadcast %cst_41 : f32 to vector<1x8xf32>
    %108 = arith.select %100, %48, %107 : vector<1x8xi1>, vector<1x8xf32>
    %cst_42 = arith.constant dense<0.000000e+00> : vector<1xf32>
    %109 = vector.multi_reduction <add>, %108, %cst_42 [1] : vector<1x8xf32> to vector<1xf32>
    %110 = vector.shape_cast %109 : vector<1xf32> to vector<1x1xf32>
    %111 = arith.divf %110, %106 : vector<1x1xf32>
    %c0_43 = arith.constant 0 : index
    %c0_44 = arith.constant 0 : index
    %112 = vector.load %arg7[%c0_43, %c0_44] : memref<1x1xf32, #tpu.memory_space<vmem>>, vector<1x1xf32>
    tpu.vector_store %arg7[%c0_43, %c0_44], %111 {strides = array<i32>} : memref<1x1xf32, #tpu.memory_space<vmem>>, vector<1x1xf32>,
    %c0_45 = arith.constant 0 : index
    %c0_46 = arith.constant 0 : index
    %113 = vector.load %arg5[%c0_45, %c0_46] : memref<1x8xi32, #tpu.memory_space<vmem>>, vector<1x8xi32>
    %114 = arith.cmpi eq, %56, %113 : vector<1x8xi32>
    %115 = arith.extui %114 : vector<1x8xi1> to vector<1x8xi32>
    %116 = arith.sitofp %115 : vector<1x8xi32> to vector<1x8xf32>
    %117 = arith.mulf %102, %116 : vector<1x8xf32>
    %cst_47 = arith.constant dense<0.000000e+00> : vector<1xf32>
    %118 = vector.multi_reduction <add>, %117, %cst_47 [1] : vector<1x8xf32> to vector<1xf32>
    %119 = vector.shape_cast %118 : vector<1xf32> to vector<1x1xf32>
    %120 = arith.divf %119, %106 : vector<1x1xf32>
    %c0_48 = arith.constant 0 : index
    %c0_49 = arith.constant 0 : index
    %121 = vector.load %arg8[%c0_48, %c0_49] : memref<1x1xf32, #tpu.memory_space<vmem>>, vector<1x1xf32>
    tpu.vector_store %arg8[%c0_48, %c0_49], %120 {strides = array<i32>} : memref<1x1xf32, #tpu.memory_space<vmem>>, vector<1x1xf32>,
    %122 = arith.extui %100 : vector<1x8xi1> to vector<1x8xi32>
    %c0_50 = arith.constant 0 : index
    %c0_51 = arith.constant 0 : index
    %123 = vector.load %arg10[%c0_50, %c0_51] : memref<1x8xi32, #tpu.memory_space<vmem>>, vector<1x8xi32>
    tpu.vector_store %arg10[%c0_50, %c0_51], %122 {strides = array<i32>} : memref<1x8xi32, #tpu.memory_space<vmem>>, vector<1x8xi32>,
    return
  }
}

</mosaic_0001>

<bundles_post_ra>
// kernel: _episode_from_data.1
= control target key start
LH: loop header
LB: loop body
LE: loop exit
PB: predicated region body
PF: predicated region fallthrough
CT: control target
= control target key end

     0   :  { %16 = vsyncpa [#allocation3], 0  ;;  %s1991_s0 = inlined_call_operand.vmem [shape: f32[16,1024], index: 0, kind: input, shape index: {}]   ;;  %s1992_s1 = inlined_call_operand.vmem [shape: bf16[1024,128], index: 1, kind: input, shape index: {}]   ;;  %s1993_s2 = inlined_call_operand.vmem [shape: f32[1,128], index: 2, kind: input, shape index: {}]   ;;  %s1994_s3 = inlined_call_operand.vmem [shape: bf16[128,128], index: 3, kind: input, shape index: {}]   ;;  %s1995_s4 = inlined_call_operand.vmem [shape: f32[1,128], index: 4, kind: input, shape index: {}]   ;;  %s1996_s5 = inlined_call_operand.vmem [shape: s32[1,8], index: 5, kind: input, shape index: {}]   ;;  %s1997_s6 = inlined_call_operand.vmem [shape: f32[12,128], index: 6, kind: output, shape index: {0}]   ;;  %s1998_s7 = inlined_call_operand.hbm [shape: f32[1,1], index: 7, kind: output, shape index: {1}]   ;;  %s1999_s8 = inlined_call_operand.hbm [shape: f32[1,1], index: 8, kind: output, shape index: {2}]   ;;  %s2000_s9 = inlined_call_operand.hbm [shape: s32[1,8], index: 9, kind: output, shape index: {3}]   ;;  %s2001_s10 = inlined_call_operand.hbm [shape: s32[1,8], index: 10, kind: output, shape index: {4}]  }
   0x1   :  { %17 = vsyncpa [#allocation5], 0  ;;  %v1362_v0 = vld [vmem:[%s1992_s1 + $0x40] sm:$0xff]   ;;  %v1366_v4 = vld [vmem:[%s1992_s1 + $0x48] sm:$0xff]  }
   0x2   :  { %v1363_v1 = vld [vmem:[%s1992_s1 + $0xc0] sm:$0xff]   ;;  %1229 = vmatprep.subr.bf16.mxu0 %v1362_v0  ;;  %v1367_v5 = vld [vmem:[%s1992_s1 + $0xc8] sm:$0xff]   ;;  %v1370_v8 = vld [vmem:[%s1992_s1 + $0x50] sm:$0xff]  }
   0x3   :  { %v1364_v2 = vld [vmem:[%s1992_s1] sm:$0xff]   ;;  %1251 = vmatprep.subr.bf16.mxu1 %v1363_v1  ;;  %v1368_v6 = vld [vmem:[%s1992_s1 + $0x8] sm:$0xff]   ;;  %v1371_v9 = vld [vmem:[%s1992_s1 + $0xd0] sm:$0xff]  }
   0x4   :  { %v1365_v3 = vld [vmem:[%s1992_s1 + $0x80] sm:$0xff]   ;;  %1230 = vmatpush3.bf16.msra.mxu0 %v1364_v2  ;;  %v1369_v7 = vld [vmem:[%s1992_s1 + $0x88] sm:$0xff]   ;;  %v1372_v10 = vld [vmem:[%s1992_s1 + $0x10] sm:$0xff]  }
   0x5   :  { %1252 = vmatpush3.bf16.msra.mxu1 %v1365_v3  ;;  %1231 = vmatprep.subr.bf16.mxu0 %v1366_v4  ;;  %v1373_v11 = vld [vmem:[%s1992_s1 + $0x90] sm:$0xff]   ;;  %v1374_v12 = vld [vmem:[%s1992_s1 + $0x58] sm:$0xff]   ;;  %v1378_v16 = vld [vmem:[%s1992_s1 + $0x60] sm:$0xff]  }
   0x6   :  { %1253 = vmatprep.subr.bf16.mxu1 %v1367_v5  ;;  %v1375_v13 = vld [vmem:[%s1992_s1 + $0xd8] sm:$0xff]   ;;  %v1379_v17 = vld [vmem:[%s1992_s1 + $0xe0] sm:$0xff]   ;;  %v1382_v20 = vld [vmem:[%s1992_s1 + $0x68] sm:$0xff]  }
   0x7   :  { %v1376_v14 = vld [vmem:[%s1992_s1 + $0x18] sm:$0xff]   ;;  %v1380_v18 = vld [vmem:[%s1992_s1 + $0x20] sm:$0xff]   ;;  %v1383_v21 = vld [vmem:[%s1992_s1 + $0xe8] sm:$0xff]  }
   0x8   :  { %1232 = vmatpush3.bf16.msra.mxu0 %v1368_v6  ;;  %v1377_v15 = vld [vmem:[%s1992_s1 + $0x98] sm:$0xff]   ;;  %v1381_v19 = vld [vmem:[%s1992_s1 + $0xa0] sm:$0xff]   ;;  %v1384_v22 = vld [vmem:[%s1992_s1 + $0x28] sm:$0xff]  }
   0x9   :  { %1254 = vmatpush3.bf16.msra.mxu1 %v1369_v7  ;;  %1233 = vmatprep.subr.bf16.mxu0 %v1370_v8  ;;  %v1385_v23 = vld [vmem:[%s1992_s1 + $0xa8] sm:$0xff]   ;;  %v1386_v24 = vld [vmem:[%s1992_s1 + $0x70] sm:$0xff]   ;;  %v1390_v28 = vld [vmem:[%s1992_s1 + $0x78] sm:$0xff]  }
   0xa   :  { %1255 = vmatprep.subr.bf16.mxu1 %v1371_v9  ;;  %v1387_v25 = vld [vmem:[%s1992_s1 + $0xf0] sm:$0xff]   ;;  %v1391_v29 = vld [vmem:[%s1992_s1 + $0xf8] sm:$0xff]   ;;  %v33_v32 = vld [vmem:[%s1991_s0 + $0x8] sm:$0xff] }
   0xb   :  { %v1388_v26 = vld [vmem:[%s1992_s1 + $0x30] sm:$0xff]   ;;  %v1392_v30 = vld [vmem:[%s1992_s1 + $0x38] sm:$0xff]   ;;  %v41_v33 = vld [vmem:[%s1991_s0 + $0x48] sm:$0xff] }
   0xc   :  { %1234 = vmatpush3.bf16.msra.mxu0 %v1372_v10  ;;  %v1389_v27 = vld [vmem:[%s1992_s1 + $0xb0] sm:$0xff]   ;;  %v1393_v31 = vld [vmem:[%s1992_s1 + $0xb8] sm:$0xff]   ;;  %v49_v35 = vpack.c.bf16 %v41_v33, %v33_v32  ;;  %v32_v37 = vld [vmem:[%s1991_s0] sm:$0xff] }
   0xd   :  { %1256 = vmatpush3.bf16.msra.mxu1 %v1373_v11  ;;  %1235 = vmatprep.subr.bf16.mxu0 %v1374_v12  ;;  %v35_v34 = vld [vmem:[%s1991_s0 + $0x18] sm:$0xff]  ;;  %v40_v38 = vld [vmem:[%s1991_s0 + $0x40] sm:$0xff]  ;;  %v34_v41 = vld [vmem:[%s1991_s0 + $0x10] sm:$0xff] }
   0xe   :  { %1257 = vmatprep.subr.bf16.mxu1 %v1375_v13  ;;  %v43_v36 = vld [vmem:[%s1991_s0 + $0x58] sm:$0xff]  ;;  %v48_v40 = vpack.c.bf16 %v40_v38, %v32_v37  ;;  %v42_v42 = vld [vmem:[%s1991_s0 + $0x50] sm:$0xff]  ;;  %607 = vmatprep.mubr.bf16.mxu0 %v49_v35  ;;  %v1394_v44 = vld [vmem:[%s1992_s1 + $0x140] sm:$0xff]  }
   0xf   :  { %v51_v39 = vpack.c.bf16 %v43_v36, %v35_v34  ;;  %v50_v43 = vpack.c.bf16 %v42_v42, %v34_v41  ;;  %v1395_v45 = vld [vmem:[%s1992_s1 + $0x1c0] sm:$0xff]   ;;  %v1398_v48 = vld [vmem:[%s1992_s1 + $0x148] sm:$0xff]   ;;  %v1402_v52 = vld [vmem:[%s1992_s1 + $0x150] sm:$0xff]  }
  0x10   :  { %1236 = vmatpush3.bf16.msra.mxu0 %v1376_v14  ;;  %v1396_v46 = vld [vmem:[%s1992_s1 + $0x100] sm:$0xff]   ;;  %v1399_v49 = vld [vmem:[%s1992_s1 + $0x1c8] sm:$0xff]   ;;  %v1403_v53 = vld [vmem:[%s1992_s1 + $0x1d0] sm:$0xff]  }
  0x11   :  { %1258 = vmatpush3.bf16.msra.mxu1 %v1377_v15  ;;  %1237 = vmatprep.subr.bf16.mxu0 %v1378_v16  ;;  %v1397_v47 = vld [vmem:[%s1992_s1 + $0x180] sm:$0xff]   ;;  %v1400_v50 = vld [vmem:[%s1992_s1 + $0x108] sm:$0xff]   ;;  %v1404_v54 = vld [vmem:[%s1992_s1 + $0x110] sm:$0xff]  }
  0x12   :  { %1259 = vmatprep.subr.bf16.mxu1 %v1379_v17  ;;  %648 = vmatprep.mubr.bf16.mxu1 %v51_v39  ;;  %v1401_v51 = vld [vmem:[%s1992_s1 + $0x188] sm:$0xff]   ;;  %v1405_v55 = vld [vmem:[%s1992_s1 + $0x190] sm:$0xff]   ;;  %v1406_v56 = vld [vmem:[%s1992_s1 + $0x158] sm:$0xff]  }
  0x13   :  { %v1407_v57 = vld [vmem:[%s1992_s1 + $0x1d8] sm:$0xff]   ;;  %v1410_v60 = vld [vmem:[%s1992_s1 + $0x160] sm:$0xff]   ;;  %v1414_v0 = vld [vmem:[%s1992_s1 + $0x168] sm:$0xff]  }
  0x14   :  { %1238 = vmatpush3.bf16.msra.mxu0 %v1380_v18  ;;  %v1408_v58 = vld [vmem:[%s1992_s1 + $0x118] sm:$0xff]   ;;  %v1411_v61 = vld [vmem:[%s1992_s1 + $0x1e0] sm:$0xff]   ;;  %v1415_v1 = vld [vmem:[%s1992_s1 + $0x1e8] sm:$0xff]  }
  0x15   :  { %1260 = vmatpush3.bf16.msra.mxu1 %v1381_v19  ;;  %1239 = vmatprep.subr.bf16.mxu0 %v1382_v20  ;;  %v1409_v59 = vld [vmem:[%s1992_s1 + $0x198] sm:$0xff]   ;;  %v1412_v62 = vld [vmem:[%s1992_s1 + $0x120] sm:$0xff]   ;;  %v1416_v2 = vld [vmem:[%s1992_s1 + $0x128] sm:$0xff]  }
  0x16   :  { %1261 = vmatprep.subr.bf16.mxu1 %v1383_v21  ;;  %v1413_v63 = vld [vmem:[%s1992_s1 + $0x1a0] sm:$0xff]   ;;  %v1417_v3 = vld [vmem:[%s1992_s1 + $0x1a8] sm:$0xff]   ;;  %v1418_v4 = vld [vmem:[%s1992_s1 + $0x170] sm:$0xff]  }
  0x17   :  { %v1419_v5 = vld [vmem:[%s1992_s1 + $0x1f0] sm:$0xff]   ;;  %v1422_v8 = vld [vmem:[%s1992_s1 + $0x178] sm:$0xff]   ;;  %v37_v12 = vld [vmem:[%s1991_s0 + $0x28] sm:$0xff] }
  0x18   :  { %1240 = vmatpush3.bf16.msra.mxu0 %v1384_v22  ;;  %v1420_v6 = vld [vmem:[%s1992_s1 + $0x130] sm:$0xff]   ;;  %v1423_v9 = vld [vmem:[%s1992_s1 + $0x1f8] sm:$0xff]   ;;  %v45_v13 = vld [vmem:[%s1991_s0 + $0x68] sm:$0xff] }
  0x19   :  { %1262 = vmatpush3.bf16.msra.mxu1 %v1385_v23  ;;  %1241 = vmatprep.subr.bf16.mxu0 %v1386_v24  ;;  %v1421_v7 = vld [vmem:[%s1992_s1 + $0x1b0] sm:$0xff]   ;;  %v1424_v10 = vld [vmem:[%s1992_s1 + $0x138] sm:$0xff]   ;;  %v53_v16 = vpack.c.bf16 %v45_v13, %v37_v12  ;;  %v36_v18 = vld [vmem:[%s1991_s0 + $0x20] sm:$0xff] }
  0x1a   :  { %1263 = vmatprep.subr.bf16.mxu1 %v1387_v25  ;;  %v1425_v11 = vld [vmem:[%s1992_s1 + $0x1b8] sm:$0xff]   ;;  %v44_v19 = vld [vmem:[%s1991_s0 + $0x60] sm:$0xff]  ;;  %v38_v20 = vld [vmem:[%s1991_s0 + $0x30] sm:$0xff] }
  0x1b   :  { %v39_v14 = vld [vmem:[%s1991_s0 + $0x38] sm:$0xff]  ;;  %v52_v21 = vpack.c.bf16 %v44_v19, %v36_v18  ;;  %v46_v22 = vld [vmem:[%s1991_s0 + $0x70] sm:$0xff] }
  0x1c   :  { %1242 = vmatpush3.bf16.msra.mxu0 %v1388_v26  ;;  %v47_v15 = vld [vmem:[%s1991_s0 + $0x78] sm:$0xff]  ;;  %v54_v23 = vpack.c.bf16 %v46_v22, %v38_v20 }
  0x1d   :  { %1264 = vmatpush3.bf16.msra.mxu1 %v1389_v27  ;;  %1243 = vmatprep.subr.bf16.mxu0 %v1390_v28  ;;  %v55_v17 = vpack.c.bf16 %v47_v15, %v39_v14 }
  0x1e   :  { %1265 = vmatprep.subr.bf16.mxu1 %v1391_v29 }
  0x20   :  { %1244 = vmatpush3.bf16.msra.mxu0 %v1392_v30 }
  0x21   :  { %1266 = vmatpush3.bf16.msra.mxu1 %v1393_v31  ;;  %1273 = vmatprep.subr.bf16.mxu0 %v1394_v44 }
  0x22   :  { %1295 = vmatprep.subr.bf16.mxu1 %v1395_v45 }
  0x23   :  { %608 = vmatmul.mubr.bf16.vlgmr.msra.gmra.mrb[0].mxu0 %v48_v40 }
  0x24   :  { %649 = vmatmul.mubr.bf16.vlgmr.msra.gmra.mrb[0].mxu1 %v50_v43  ;;  %1274 = vmatpush3.bf16.msra.mxu0 %v1396_v46 }
  0x25   :  { %1296 = vmatpush3.bf16.msra.mxu1 %v1397_v47  ;;  %1275 = vmatprep.subr.bf16.mxu0 %v1398_v48 }
  0x26   :  { %1297 = vmatprep.subr.bf16.mxu1 %v1399_v49  ;;  %689 = vmatprep.mubr.bf16.mxu0 %v53_v16 }
  0x27   :  { %730 = vmatprep.mubr.bf16.mxu1 %v55_v17 }
  0x28   :  { %1276 = vmatpush3.bf16.msra.mxu0 %v1400_v50 }
  0x29   :  { %1298 = vmatpush3.bf16.msra.mxu1 %v1401_v51  ;;  %1277 = vmatprep.subr.bf16.mxu0 %v1402_v52 }
  0x2a   :  { %1299 = vmatprep.subr.bf16.mxu1 %v1403_v53 }
  0x2c   :  { %1278 = vmatpush3.bf16.msra.mxu0 %v1404_v54 }
  0x2d   :  { %1300 = vmatpush3.bf16.msra.mxu1 %v1405_v55  ;;  %1279 = vmatprep.subr.bf16.mxu0 %v1406_v56 }
  0x2e   :  { %1301 = vmatprep.subr.bf16.mxu1 %v1407_v57 }
  0x30   :  { %1280 = vmatpush3.bf16.msra.mxu0 %v1408_v58 }
  0x31   :  { %1302 = vmatpush3.bf16.msra.mxu1 %v1409_v59  ;;  %1281 = vmatprep.subr.bf16.mxu0 %v1410_v60 }
  0x32   :  { %1303 = vmatprep.subr.bf16.mxu1 %v1411_v61 }
  0x34   :  { %1282 = vmatpush3.bf16.msra.mxu0 %v1412_v62 }
  0x35   :  { %1304 = vmatpush3.bf16.msra.mxu1 %v1413_v63  ;;  %1283 = vmatprep.subr.bf16.mxu0 %v1414_v0 }
  0x36   :  { %1305 = vmatprep.subr.bf16.mxu1 %v1415_v1 }
  0x38   :  { %1284 = vmatpush3.bf16.msra.mxu0 %v1416_v2 }
  0x39   :  { %1306 = vmatpush3.bf16.msra.mxu1 %v1417_v3  ;;  %1285 = vmatprep.subr.bf16.mxu0 %v1418_v4 }
  0x3a   :  { %1307 = vmatprep.subr.bf16.mxu1 %v1419_v5 }
  0x3c   :  { %1286 = vmatpush3.bf16.msra.mxu0 %v1420_v6 }
  0x3d   :  { %1308 = vmatpush3.bf16.msra.mxu1 %v1421_v7  ;;  %1287 = vmatprep.subr.bf16.mxu0 %v1422_v8 }
  0x3e   :  { %1309 = vmatprep.subr.bf16.mxu1 %v1423_v9 }
  0x40   :  { %1288 = vmatpush3.bf16.msra.mxu0 %v1424_v10 }
  0x41   :  { %1310 = vmatpush3.bf16.msra.mxu1 %v1425_v11 }
  0x43   :  { %690 = vmatmul.mubr.bf16.vlgmr.msra.gmra.mrb[4].mxu0 %v52_v21 }
  0x44   :  { %731 = vmatmul.mubr.bf16.vlgmr.msra.gmra.mrb[4].mxu1 %v54_v23 }
  0x45   :  { %18 = vsyncpa [#allocation8], 0  ;;  %v1426_v24 = vld [vmem:[%s1994_s3] sm:$0xff]   ;;  %v1534_v25 = vmov 0.0   ;;  %v1427_v26 = vld [vmem:[%s1994_s3 + $0x8] sm:$0xff]   ;;  %vm1535_vm0 = vmmov 0  }
  0x46   :  { %1328 = vmatprep.subr.bf16.mxu0 %v1534_v25  ;;  %1348 = vmatprep.subr.mxu1 %v1534_v25  ;;  %v1428_v27 = vld [vmem:[%s1994_s3 + $0x10] sm:$0xff]   ;;  %v1429_v28 = vld [vmem:[%s1994_s3 + $0x18] sm:$0xff]   ;;  %v1430_v29 = vld [vmem:[%s1994_s3 + $0x20] sm:$0xff]   ;;  %vm858_vm1 = vcmask 1043456   ;;  %vm939_vm2 = vcmask 60416   ;;  %vm991_vm4 = vcmask 57344  }
  0x47   :  { %1329 = vmatpush3.bf16.msra.mxu0 %v1426_v24  ;;  %v1431_v30 = vld [vmem:[%s1994_s3 + $0x28] sm:$0xff]   ;;  %v1432_v31 = vld [vmem:[%s1994_s3 + $0x30] sm:$0xff]   ;;  %v1433_v32 = vld [vmem:[%s1994_s3 + $0x38] sm:$0xff]   ;;  %1344 = vmatprep.mubr.msk.bf16.mxu0 %vm1535_vm0, %v1534_v25  ;;  %v961_v24 = vlaneseq  ;;  %vm995_vm6 = vcmask 64512  }
  0x48   :  { %1330 = vmatprep.subr.bf16.mxu0 %v1534_v25  ;;  %1350 = vmatprep.mubr.msk.f32.mxu1 %vm1535_vm0, %v1534_v25  ;;  %v1151_v35 = vld [vmem:[%s1993_s2] ss:$0 sm:$0xff] }
  0x49   :  { %v1216_v5 = vld [vmem:[%s1995_s4] ss:$0 sm:$0xff] }
  0x4b   :  { %1331 = vmatpush3.bf16.msra.mxu0 %v1427_v26 }
  0x4c   :  { %1332 = vmatprep.subr.bf16.mxu0 %v1534_v25 }
  0x4f   :  { %1333 = vmatpush3.bf16.msra.mxu0 %v1428_v27 }
  0x50   :  { %1334 = vmatprep.subr.bf16.mxu0 %v1534_v25 }
  0x53   :  { %1335 = vmatpush3.bf16.msra.mxu0 %v1429_v28  ;;  %v962_v28 = vshrl.u32 %v961_v24, 7 }
  0x54   :  { %1336 = vmatprep.subr.bf16.mxu0 %v1534_v25 }
  0x57   :  { %1337 = vmatpush3.bf16.msra.mxu0 %v1430_v29 }
  0x58   :  { %1338 = vmatprep.subr.bf16.mxu0 %v1534_v25 }
  0x5b   :  { %1339 = vmatpush3.bf16.msra.mxu0 %v1431_v30 }
  0x5c   :  { %1340 = vmatprep.subr.bf16.mxu0 %v1534_v25 }
  0x5f   :  { %1341 = vmatpush3.bf16.msra.mxu0 %v1432_v31  ;;  %v980_v31 = vcvt.s32.f32 %v962_v28 }
  0x60   :  { %1342 = vmatprep.subr.bf16.mxu0 %v1534_v25 }
  0x63   :  { %1343 = vmatpush3.bf16.msra.mxu0 %v1433_v32 }
  0xf6   :  { %v1245_v33 = vpop.f32.mrb[0].mxu0 }
  0xf7   :  { %v1267_v34 = vpop.f32.mrb[0].mxu1  ;;  %v1246_v36 = vpop.f32.mrb[1].mxu0 }
  0xf8   :  { %v1247_v37 = vadd.f32 %v1246_v36, %v1245_v33  ;;  %v1268_v38 = vpop.f32.mrb[1].mxu1  ;;  %v1248_v39 = vpop.f32.mrb[2].mxu0 }
  0xf9   :  { %v1269_v40 = vadd.f32 %v1268_v38, %v1267_v34  ;;  %v1270_v41 = vpop.f32.mrb[2].mxu1  ;;  %v1249_v42 = vpop.f32.mrb[3].mxu0 }
  0xfa   :  { %v610_v43 = vadd.f32 %v1247_v37, %v1151_v35  ;;  %v1250_v44 = vadd.f32 %v1249_v42, %v1248_v39  ;;  %v1271_v45 = vpop.f32.mrb[3].mxu1 }
  0xfb   :  { %v1272_v46 = vadd.f32 %v1271_v45, %v1270_v41 }
  0xfc   :  { %v651_v47 = vadd.f32 %v1269_v40, %v610_v43  ;;  %v613_v48 = vadd.f32 %v1250_v44, %v1151_v35 }
  0xfe   :  { %v654_v49 = vadd.f32 %v1272_v46, %v613_v48 }
 0x116   :  { %v1289_v50 = vpop.f32.mrb[4].mxu0 }
 0x117   :  { %v1311_v51 = vpop.f32.mrb[4].mxu1  ;;  %v1290_v52 = vpop.f32.mrb[5].mxu0 }
 0x118   :  { %v1291_v53 = vadd.f32 %v1290_v52, %v1289_v50  ;;  %v1312_v54 = vpop.f32.mrb[5].mxu1  ;;  %v1292_v55 = vpop.f32.mrb[6].mxu0 }
 0x119   :  { %v1313_v56 = vadd.f32 %v1312_v54, %v1311_v51  ;;  %v1314_v57 = vpop.f32.mrb[6].mxu1  ;;  %v1293_v58 = vpop.f32.mrb[7].mxu0 }
 0x11a   :  { %v692_v59 = vadd.f32 %v1291_v53, %v651_v47  ;;  %v1294_v60 = vadd.f32 %v1293_v58, %v1292_v55  ;;  %v1315_v61 = vpop.f32.mrb[7].mxu1  ;;  %v1225_v53 = vld [vmem:[%s1996_s5] ss:$0 sm:$0xff] }
 0x11b   :  { %v1316_v62 = vadd.f32 %v1315_v61, %v1314_v57  ;;  %vm968_vm5 = vcmp.eq.s32.totalorder %v962_v28, %v1225_v53 }
 0x11c   :  { %v733_v63 = vadd.f32 %v1313_v56, %v692_v59  ;;  %v695_v0 = vadd.f32 %v1294_v60, %v654_v49  ;;  %v1226_v57 = vsel %vm968_vm5, 1.0, %v1534_v25 }
 0x11e   :  { %v736_v1 = vadd.f32 %v1316_v62, %v695_v0  ;;  %v739_v2 = vmax.f32 %v733_v63, 0.0 }
 0x120   :  { %v740_v3 = vmax.f32 %v736_v1, 0.0 }
 0x122   :  { %v741_v4 = vpack.c.bf16 %v740_v3, %v739_v2 }
 0x124   :  { %1345 = vmatmul.mubr.bf16.vlgmr.msra.gmra.mrb[8].mxu0 %v741_v4 }
 0x1f7   :  { %v847_v6 = vpop.f32.mrb[8].mxu0 }
 0x1f8   :  { %v848_v7 = vadd.f32 %v1216_v5, %v847_v6  ;;  %v1346_v8 = vpop.f32.mrb[9].mxu0 }
 0x1f9   :  { %v850_v9 = vpop.f32.mrb[10].mxu0 }
 0x1fa   :  { %854 = vst [vmem:[%s1997_s6] sm:$0xff] %v848_v7  ;;  %v851_v10 = vadd.f32 %v1216_v5, %v850_v9  ;;  %v1347_v11 = vpop.f32.mrb[11].mxu0  ;;  %v933_v12 = vmul.f32 %v848_v7, %v848_v7  ;;  %v859_v15 = vrot.slane %v848_v7, 4  ;;  %v1899_v5 = vand.u32 127, %v961_v24 }
 0x1fc   :  { %855 = vst [vmem:[%s1997_s6 + $0x8] sm:$0xf] %v851_v10  ;;  %v860_v13 = vrot.slane %v851_v10, 4  ;;  %v934_v14 = vsel %vm858_vm1, %v933_v12, 0.0 }
 0x1fd   :  { %935 = vadd.xlane.f32.xlu0 %v934_v14 }
 0x1fe   :  { %v861_v16 = vsel %vm858_vm1, %v859_v15, %v860_v13 }
 0x1ff   :  { %1349 = vmatpush3.xpose.msra.mxu1 %v861_v16 }
 0x202   :  { %1351 = vmatmul.mubr.f32.vlgmr.msra.gmra.mrb[8].mxu1 %v848_v7 }
 0x28a   :  { %v936_v20 = vpop.xlane.xlu0 %935 }
 0x2d5   :  { %v929_v17 = vpop.f32.mrb[8].mxu1 }
 0x2d6   :  { %v937_v18 = vmul.f32 2.0, %v929_v17  ;;  %v1352_v19 = vpop.f32.mrb[9].mxu1 }
 0x2d8   :  { %v938_v21 = vsub.f32 %v937_v18, %v936_v20 }
 0x2da   :  { %v940_v22 = vsel %vm939_vm2, %v938_v21, -inf }
 0x2db   :  { %v941_v23 = vrot.slane %v940_v22, 4 }
 0x2dd   :  { %v942_v26 = vmax.f32 %v940_v22, %v941_v23 }
 0x2df   :  { %v943_v27 = vrot.slane %v942_v26, 2 }
 0x2e1   :  { %v944_v29 = vmax.f32 %v942_v26, %v943_v27 }
 0x2e3   :  { %v945_v30 = vrot.slane %v944_v29, 1 }
 0x2e5   :  { %v946_v32 = vmax.f32 %v944_v29, %v945_v30 }
 0x2e7   :  { %v947_v33 = vsub.f32 %v938_v21, %v946_v32  ;;  %vm981_vm3 = vcmp.ge.f32.partialorder %v938_v21, %v946_v32 }
 0x2e8   :  { %v982_v34 = vsel %vm981_vm3, %v980_v31, 1e+09 }
 0x2e9   :  { %v948_v35 = vmul.f32 1.442695, %v947_v33  ;;  %v983_v36 = vsel %vm939_vm2, %v982_v34, inf }
 0x2ea   :  { %v984_v37 = vrot.slane %v983_v36, 4 }
 0x2eb   :  { %1434 = vpow2.f32 %v948_v35 }
 0x2ec   :  { %v985_v38 = vmin.f32 %v983_v36, %v984_v37 }
 0x2ee   :  { %v986_v39 = vrot.slane %v985_v38, 2 }
 0x2f0   :  { %v987_v40 = vmin.f32 %v985_v38, %v986_v39 }
 0x2f2   :  { %v988_v41 = vrot.slane %v987_v40, 1 }
 0x2f4   :  { %v989_v42 = vmin.f32 %v987_v40, %v988_v41 }
 0x2f5   :  { %v1435_v43 = vpop.eup %1434 }
 0x2f6   :  { %v950_v44 = vsel %vm939_vm2, %v1435_v43, 0.0  ;;  %v1353_v45 = vtrunc.f32 %v989_v42 }
 0x2f7   :  { %v951_v46 = vrot.slane %v950_v44, 4 }
 0x2f8   :  { %v1886_v47 = vcvt.f32.s32 %v1353_v45 }
 0x2f9   :  { %v952_v48 = vadd.f32 %v951_v46, %v950_v44 }
 0x2fa   :  { %992 = vst.msk [vmem:[#allocation6] sm:$0x1] %vm991_vm4, %v1886_v47 }
 0x2fb   :  { %v953_v49 = vrot.slane %v952_v48, 2 }
 0x2fd   :  { %v954_v50 = vadd.f32 %v953_v49, %v952_v48 }
 0x2ff   :  { %v955_v51 = vrot.slane %v954_v50, 1 }
 0x301   :  { %v956_v52 = vadd.f32 %v955_v51, %v954_v50 }
 0x303   :  { %1436 = vlog2.f32 %v956_v52 }
 0x30d   :  { %v1437_v54 = vpop.eup %1436 }
 0x30e   :  { %v958_v55 = vmul.f32 0.6931472, %v1437_v54 }
 0x310   :  { %v959_v56 = vadd.f32 %v958_v55, %v946_v32 }
 0x312   :  { %v960_v58 = vsub.f32 %v938_v21, %v959_v56  ;;  %v1081_v56 = vld [vmem:[%s1996_s5] sm:$0x1]  ;;  %s1537_s5 = smov [#allocation7]  }
 0x313   :  { %vm1082_vm0 = vcmp.eq.s32.totalorder %v1886_v47, %v1081_v56  ;;  %s1130_s14 = sshll.u32 %s1537_s5, 4  ;;  %s1131_s14 = int_to_ptr.vmem [resolvable:$true] %s1130_s14 }
 0x314   :  { %v971_v59 = vmul.f32 %v1226_v57, %v960_v58  ;;  %s1440_s15 = scalar_lea.vmem %s1131_s14, 16  ;;  %s1444_s0 = scalar_lea.vmem %s1131_s14, 32 }
 0x315   :  { %p1441_p0 = scmp.ne.s32.totalorder %s1131_s14, %s1440_s15  ;;  %p1445_p1 = scmp.lt.s32.totalorder %s1131_s14, %s1131_s14 }
 0x316   :  { %v972_v60 = vsel %vm939_vm2, %v971_v59, 0.0  ;;  %p1446_p2 = scmp.lt.s32.totalorder %s1444_s0, %s1440_s15 }
 0x317   :  { %v973_v61 = vrot.slane %v972_v60, 4 }
 0x318   :  { %p1447_p3 = por %p1446_p2, %p1445_p1 }
 0x319   :  { %v974_v62 = vadd.f32 %v973_v61, %v972_v60  ;;  %v1228_v60 = vsel %vm1082_vm0, 1.0, %v1534_v25  ;;  %v1536_v61 = vmov 0  }
 0x31a   :  { %p1448_p4 = pnand %p1447_p3, %p1441_p0 }
 0x31b   :  { %v975_v63 = vrot.slane %v974_v62, 2 }
 0x31d   :  { %v976_v0 = vadd.f32 %v975_v63, %v974_v62 }
 0x31f   :  { %v977_v1 = vrot.slane %v976_v0, 1 }
 0x321   :  { %v978_v2 = vadd.f32 %v977_v1, %v976_v0 }
 0x323   :  { %v1895_v3 = vsub.f32 0.0, %v978_v2 }
 0x325   :  { %v996_v4 = vsel %vm995_vm6, %v1895_v3, -inf }
 0x326   :  { %997 = vmax.xlane.f32.xlu0 %v996_v4 }
 0x3b3   :  { %v998_v6 = vpop.xlane.xlu0 %997 }
 0x3b4   :  { %vm999_vm7 = vcmp.ge.f32.partialorder %v1895_v3, %v998_v6 }
 0x3b5   :  { %v1000_v7 = vsel %vm999_vm7, %v1899_v5, 8 }
 0x3b6   :  { %v1001_v8 = vsel %vm995_vm6, %v1000_v7, 2147483647 }
 0x3b7   :  { %v1003_v9 = vshra.s32 %v1001_v8, 16  ;;  %v1002_v11 = vand.u32 65535, %v1001_v8 }
 0x3b9   :  { %v1005_v10 = vcvt.s32.f32 %v1003_v9  ;;  %v1004_v13 = vcvt.s32.f32 %v1002_v11 }
 0x3bb   :  { %1006 = vmin.xlane.f32.xlu1 %v1005_v10 }
 0x448   :  { %v1007_v12 = vpop.xlane.xlu1 %1006 }
 0x449   :  { %vm1008_vm8 = vcmp.eq.f32.partialorder %v1005_v10, %v1007_v12  ;;  %v1013_v15 = vcvt.f32.s32 %v1007_v12 }
 0x44a   :  { %v1009_v14 = vsel %vm1008_vm8, %v1004_v13, inf }
 0x44b   :  { %1010 = vmin.xlane.f32.xlu1 %v1009_v14  ;;  %v1014_v17 = vshll.u32 %v1013_v15, 16 }
 0x4d8   :  { %v1011_v16 = vpop.xlane.xlu1 %1010 }
 0x4d9   :  { %v1012_v18 = vcvt.f32.s32 %v1011_v16 }
 0x4db   :  { %v1015_v19 = vadd.s32 %v1014_v17, %v1012_v18 }
 0x4dd   :  { %vm1016_vm9 = vcmp.eq.s32.totalorder %v1899_v5, %v1015_v19 }
 0x4de   :  { %v1017_v20 = vsel %vm1016_vm9, -inf, %v1895_v3 }
 0x4df   :  { %v1018_v21 = vsel %vm995_vm6, %v1017_v20, -inf }
 0x4e0   :  { %1019 = vmax.xlane.f32.xlu0 %v1018_v21 }
 0x56d   :  { %v1020_v22 = vpop.xlane.xlu0 %1019 }
 0x56e   :  { %vm1021_vm10 = vcmp.ge.f32.partialorder %v1017_v20, %v1020_v22 }
 0x56f   :  { %v1022_v23 = vsel %vm1021_vm10, %v1899_v5, 8 }
 0x570   :  { %v1023_v24 = vsel %vm995_vm6, %v1022_v23, 2147483647 }
 0x571   :  { %v1025_v26 = vshra.s32 %v1023_v24, 16  ;;  %v1024_v28 = vand.u32 65535, %v1023_v24 }
 0x573   :  { %v1027_v27 = vcvt.s32.f32 %v1025_v26  ;;  %v1026_v30 = vcvt.s32.f32 %v1024_v28 }
 0x575   :  { %1028 = vmin.xlane.f32.xlu1 %v1027_v27 }
 0x602   :  { %v1029_v29 = vpop.xlane.xlu1 %1028 }
 0x603   :  { %vm1030_vm11 = vcmp.eq.f32.partialorder %v1027_v27, %v1029_v29  ;;  %v1035_v32 = vcvt.f32.s32 %v1029_v29 }
 0x604   :  { %v1031_v31 = vsel %vm1030_vm11, %v1026_v30, inf }
 0x605   :  { %1032 = vmin.xlane.f32.xlu0 %v1031_v31  ;;  %v1036_v34 = vshll.u32 %v1035_v32, 16 }
 0x692   :  { %v1033_v33 = vpop.xlane.xlu0 %1032 }
 0x693   :  { %v1034_v35 = vcvt.f32.s32 %v1033_v33 }
 0x695   :  { %v1037_v36 = vadd.s32 %v1036_v34, %v1034_v35 }
 0x697   :  { %vm1038_vm12 = vcmp.eq.s32.totalorder %v1899_v5, %v1037_v36 }
 0x698   :  { %v1039_v37 = vsel %vm1038_vm12, -inf, %v1017_v20 }
 0x699   :  { %v1040_v38 = vsel %vm995_vm6, %v1039_v37, -inf }
 0x69a   :  { %1041 = vmax.xlane.f32.xlu1 %v1040_v38 }
 0x727   :  { %v1042_v39 = vpop.xlane.xlu1 %1041 }
 0x728   :  { %vm1043_vm13 = vcmp.ge.f32.partialorder %v1039_v37, %v1042_v39 }
 0x729   :  { %v1044_v40 = vsel %vm1043_vm13, %v1899_v5, 8 }
 0x72a   :  { %v1045_v41 = vsel %vm995_vm6, %v1044_v40, 2147483647 }
 0x72b   :  { %v1047_v42 = vshra.s32 %v1045_v41, 16  ;;  %v1046_v44 = vand.u32 65535, %v1045_v41 }
 0x72d   :  { %v1049_v43 = vcvt.s32.f32 %v1047_v42  ;;  %v1048_v46 = vcvt.s32.f32 %v1046_v44 }
 0x72f   :  { %1050 = vmin.xlane.f32.xlu0 %v1049_v43 }
 0x7bc   :  { %v1051_v45 = vpop.xlane.xlu0 %1050 }
 0x7bd   :  { %vm1052_vm14 = vcmp.eq.f32.partialorder %v1049_v43, %v1051_v45  ;;  %v1057_v49 = vcvt.f32.s32 %v1051_v45 }
 0x7be   :  { %v1053_v48 = vsel %vm1052_vm14, %v1048_v46, inf }
 0x7bf   :  { %1054 = vmin.xlane.f32.xlu1 %v1053_v48  ;;  %v1058_v51 = vshll.u32 %v1057_v49, 16 }
 0x84c   :  { %v1055_v50 = vpop.xlane.xlu1 %1054 }
 0x84d   :  { %v1056_v52 = vcvt.f32.s32 %v1055_v50 }
 0x84f   :  { %v1059_v53 = vadd.s32 %v1058_v51, %v1056_v52 }
 0x851   :  { %vm1060_vm15 = vcmp.eq.s32.totalorder %v1899_v5, %v1059_v53 }
 0x852   :  { %v1061_v54 = vsel %vm1060_vm15, -inf, %v1039_v37 }
 0x853   :  { %v1062_v55 = vsel %vm995_vm6, %v1061_v54, -inf }
 0x854   :  { %1063 = vmax.xlane.f32.xlu0 %v1062_v55 }
 0x8e1   :  { %v1064_v57 = vpop.xlane.xlu0 %1063 }
 0x8e2   :  { %v1065_v58 = vadd.f32 0.001, %v1064_v57 }
 0x8e4   :  { %vm1066_vm1 = vcmp.lt.f32.partialorder %v1895_v3, %v1065_v58 }
 0x8e5   :  { %v1227_v59 = vsel %vm1066_vm1, 1.0, %v1534_v25  ;;  %v1067_v62 = vsel %vm1066_vm1, 1, %v1536_v61  ;;  %v1073_v1 = vsel %vm1066_vm1, %v1895_v3, 0.0 }
 0x8e6   :  { %v1069_v63 = vsel %vm995_vm6, %v1227_v59, 0.0  ;;  %v1085_v0 = vmul.f32 %v1228_v60, %v1227_v59  ;;  %1091 = vst.msk [vmem:[#allocation7] sm:$0x1] %vm991_vm4, %v1067_v62  ;;  %v1074_v47 = vsel %vm995_vm6, %v1073_v1, 0.0 }
 0x8e7   :  { %1070 = vadd.xlane.f32.xlu1 %v1069_v63 }
 0x8e8   :  { %v1086_v2 = vsel %vm991_vm4, %v1085_v0, 0.0 }
 0x8e9   :  { %1087 = vadd.xlane.f32.xlu0 %v1086_v2 }
 0x8eb   :  { %1075 = vadd.xlane.f32.xlu1 %v1074_v47 }
 0x8ec   :  { %1451 = shalt.err (!%p1448_p4)
}
 0x8ed   :  { %s1452_s18 = scalar_lea.hbm %s2001_s10, 16 }
 0x8ee   :  { %p1453_p5 = scmp.ne.s32.totalorder %s2001_s10, %s1452_s18  ;;  %p1456_p6 = scmp.lt.u32.totalorder %s1452_s18, %s2001_s10 }
 0x8f0   :  { %p1458_p7 = pnand %p1456_p6, %p1453_p5 }
 0x8f2   :  { %1461 = shalt.err (!%p1458_p7)
}
 0x8f3   :  { %1133 = dma.vmem_to_hbm [thread:$0]  %s1131_s14, 16, %s2001_s10, [#allocation8]   ;;  %vm1079_vm2 = vcmask 0  }
 0x8f4   :  { %s1538_s1 = smov [#allocation4]   ;;  %s1539_s26 = smov [#allocation2]  }
 0x8f5   :  { %s1110_s25 = sshll.u32 %s1538_s1, 4  ;;  %s1100_s27 = sshll.u32 %s1539_s26, 4  ;;  %s1111_s25 = int_to_ptr.vmem [resolvable:$true] %s1110_s25  ;;  %s1939_s27 = int_to_ptr.vmem [resolvable:$true] %s1100_s27 }
 0x8f6   :  { %s1540_s2 = smov [#allocation6]   ;;  %s1462_s10 = scalar_lea.vmem %s1111_s25, 16 }
 0x8f7   :  { %s1120_s3 = sshll.u32 %s1540_s2, 4  ;;  %p1463_p8 = scmp.ne.s32.totalorder %s1111_s25, %s1462_s10  ;;  %s1941_s3 = int_to_ptr.vmem [resolvable:$true] %s1120_s3 }
 0x8f8   :  { %s1466_s28 = scalar_lea.vmem %s1111_s25, 32  ;;  %p1467_p9 = scmp.lt.s32.totalorder %s1111_s25, %s1111_s25 }
 0x8f9   :  { %p1468_p10 = scmp.lt.s32.totalorder %s1466_s28, %s1462_s10 }
 0x8fb   :  { %p1469_p11 = por %p1468_p10, %p1467_p9 }
 0x8fd   :  { %p1470_p12 = pnand %p1469_p11, %p1463_p8 }
 0x974   :  { %v1071_v25 = vpop.xlane.xlu1 %1070 }
 0x975   :  { %v1072_v3 = vmax.f32 %v1071_v25, 1.0 }
 0x976   :  { %v1088_v5 = vpop.xlane.xlu0 %1087 }
 0x977   :  { %1438 = vrcp.f32 %v1072_v3 }
 0x978   :  { %v1076_v6 = vpop.xlane.xlu1 %1075 }
 0x981   :  { %v1439_v4 = vpop.eup %1438 }
 0x982   :  { %v1089_v7 = vmul.f32 %v1439_v4, %v1088_v5  ;;  %v1078_v8 = vmul.f32 %v1439_v4, %v1076_v6 }
 0x984   :  { %1090 = vst.msk [vmem:[#allocation4] sm:$0x1] %vm1079_vm2, %v1089_v7  ;;  %1080 = vst.msk [vmem:[#allocation2] sm:$0x1] %vm1079_vm2, %v1078_v8 }
 0x985   :  { %1473 = shalt.err (!%p1470_p12)
}
 0x986   :  { %s1474_s11 = scalar_lea.hbm %s1999_s8, 16 }
 0x987   :  { %p1475_p13 = scmp.ne.s32.totalorder %s1999_s8, %s1474_s11  ;;  %p1478_p0 = scmp.lt.u32.totalorder %s1474_s11, %s1999_s8 }
 0x989   :  { %p1480_p1 = pnand %p1478_p0, %p1475_p13 }
 0x98b   :  { %1483 = shalt.err (!%p1480_p1)
}
 0x98c   :  { %1113 = dma.vmem_to_hbm [thread:$0]  %s1111_s25, 16, %s1999_s8, [#allocation5]  }
 0x98d   :  { %s1484_s15 = scalar_lea.vmem %s1939_s27, 16  ;;  %s1488_s0 = scalar_lea.vmem %s1939_s27, 32 }
 0x98e   :  { %p1485_p2 = scmp.ne.s32.totalorder %s1939_s27, %s1484_s15  ;;  %p1489_p3 = scmp.lt.s32.totalorder %s1939_s27, %s1939_s27 }
 0x98f   :  { %p1490_p4 = scmp.lt.s32.totalorder %s1488_s0, %s1484_s15 }
 0x991   :  { %p1491_p5 = por %p1490_p4, %p1489_p3 }
 0x993   :  { %p1492_p6 = pnand %p1491_p5, %p1485_p2 }
 0x995   :  { %1495 = shalt.err (!%p1492_p6)
}
 0x996   :  { %s1496_s18 = scalar_lea.hbm %s1998_s7, 16 }
 0x997   :  { %p1497_p7 = scmp.ne.s32.totalorder %s1998_s7, %s1496_s18  ;;  %p1500_p8 = scmp.lt.u32.totalorder %s1496_s18, %s1998_s7 }
 0x999   :  { %p1502_p9 = pnand %p1500_p8, %p1497_p7 }
 0x99b   :  { %1505 = shalt.err (!%p1502_p9)
}
 0x99c   :  { %1103 = dma.vmem_to_hbm [thread:$0]  %s1939_s27, 16, %s1998_s7, [#allocation3]  }
 0x99d   :  { %s1506_s24 = scalar_lea.vmem %s1941_s3, 16  ;;  %s1510_s1 = scalar_lea.vmem %s1941_s3, 32 }
 0x99e   :  { %p1507_p10 = scmp.ne.s32.totalorder %s1941_s3, %s1506_s24  ;;  %p1511_p11 = scmp.lt.s32.totalorder %s1941_s3, %s1941_s3 }
 0x99f   :  { %p1512_p12 = scmp.lt.s32.totalorder %s1510_s1, %s1506_s24 }
 0x9a1   :  { %p1513_p13 = por %p1512_p12, %p1511_p11 }
 0x9a3   :  { %p1514_p0 = pnand %p1513_p13, %p1507_p10 }
 0x9a5   :  { %1517 = shalt.err (!%p1514_p0)
}
 0x9a6   :  { %s1518_s2 = scalar_lea.hbm %s2000_s9, 16 }
 0x9a7   :  { %p1519_p1 = scmp.ne.s32.totalorder %s2000_s9, %s1518_s2  ;;  %p1522_p2 = scmp.lt.u32.totalorder %s1518_s2, %s2000_s9 }
 0x9a9   :  { %p1524_p3 = pnand %p1522_p2, %p1519_p1 }
 0x9ab   :  { %1527 = shalt.err (!%p1524_p3)
}
 0x9ac   :  { %1123 = dma.vmem_to_hbm [thread:$0]  %s1941_s3, 16, %s2000_s9, [#allocation5]  }
 0x9ad   :  { %1528 = dma.done.wait [#allocation3], 16  }
 0x9ae   :  { %1529 = vsyncadd [#allocation3], 4294967280 }
 0x9af   :  { %1530 = dma.done.wait [#allocation5], 32  }
 0x9b0   :  { %1531 = vsyncadd [#allocation5], 4294967264 }
 0x9b1   :  { %1532 = dma.done.wait [#allocation8], 16  }
 0x9b2   :  { %1533 = vsyncadd [#allocation8], 4294967280 }
 0x9b3   :  { %1148 = vsyncpa [#allocation3], 1 }
 0x9b4   :  { %1149 = vsyncpa [#allocation5], 1 }
 0x9b5   :  { %1150 = vsyncpa [#allocation8], 1 }

</bundles_post_ra>
